<compile_context>
chip_gen: v5e
topology: v5e:2x2
jax: 0.10.0
libtpu: 0.0.40
codegen_flags: <defaults>
</compile_context>

<pallas_src>
import jax
import jax.numpy as jnp
from jax.experimental import pallas as pl
from jax.experimental.pallas import tpu as pltpu

TEMPERATURE = 0.05

_LANE = 128
_TILE_D_TARGET = 1024            # lane-axis tile target (multiple of 128)
_TILE_N_TARGET = 1024            # contraction-axis tile target (~4 MiB f32 X step)
_RESIDENT_P_BYTES = 4 << 20      # keep P fully resident in VMEM if <= this
_SOFTMAX_SINGLE_BLOCK_BYTES = 16 << 20


def _round_up(x, m):
    return -(-x // m) * m


def _choose_d_tile(D):
    """Return (td, padded_D). Lane-multiple tiles, >=2 tiles when possible so
    the 'parallel' D axis can shard across v7x's 2 TensorCores; prefer the
    largest tile whose zero-padding waste is <= 12.5%."""
    if D < 2 * _LANE:
        return D, D                                    # single full-extent tile
    cap = max(_LANE, min(_TILE_D_TARGET, ((D // 2) // _LANE) * _LANE))
    best = None
    for t in range(cap, _LANE - 1, -_LANE):
        pad = _round_up(D, t) - D
        if pad == 0:
            return t, D
        if best is None or pad < best[1]:
            best = (t, pad)
        if pad * 8 <= D:                                # <= 12.5% waste
            return t, D + pad
    t, pad = best
    return t, D + pad


def _choose_n_tile(N):
    """Return (tn, padded_N) for the streamed contraction axis."""
    if N <= _TILE_N_TARGET:
        return N, N                                     # single reduction step
    best = None
    for t in range(_TILE_N_TARGET, _LANE - 1, -_LANE):
        pad = _round_up(N, t) - N
        if pad == 0:
            return t, N
        if best is None or pad < best[1]:
            best = (t, pad)
        if pad * 8 <= N:
            return t, N + pad
    t, pad = best
    return t, N + pad


# --------------------------------------------------------------------------
# Kernel 1: row softmax of the anchor logits, P = softmax(Q / T, axis=1).
# --------------------------------------------------------------------------
def _softmax_kernel(q_ref, p_ref):
    s = q_ref[...].astype(jnp.float32) * (1.0 / TEMPERATURE)
    s = s - jnp.max(s, axis=1, keepdims=True)
    e = jnp.exp(s)
    inv = pl.reciprocal(jnp.sum(e, axis=1, keepdims=True), approx=False)
    p_ref[...] = (e * inv).astype(p_ref.dtype)


def _softmax_rows(Q, out_dtype):
    A, N = Q.shape
    if A * N * 4 > _SOFTMAX_SINGLE_BLOCK_BYTES:
        # TODO(synk): extremely large A*N softmax left to XLA; the streaming
        # matmul kernel below is the bandwidth-bound part either way.
        return jax.nn.softmax(
            Q.astype(jnp.float32) / TEMPERATURE, axis=1).astype(out_dtype)
    return pl.pallas_call(
        _softmax_kernel,
        out_shape=jax.ShapeDtypeStruct((A, N), out_dtype),
    )(Q)


# --------------------------------------------------------------------------
# Kernel 2: anchors = P @ X, streamed over (D tiles x N tiles).
# --------------------------------------------------------------------------
def _make_matmul_kernel(p_resident):
    def kernel(p_ref, x_ref, o_ref, acc_ref):
        # p_ref: (gn, A, tn) resident  |  (A, tn) per-tile
        # x_ref: (tn, td)    o_ref: (A, td)    acc_ref: (A, td) f32
        n_idx = pl.program_id(1)

        @pl.when(n_idx == 0)
        def _():
            acc_ref[...] = jnp.zeros_like(acc_ref)

        p_tile = p_ref[n_idx] if p_resident else p_ref[...]
        acc_ref[...] += jnp.dot(p_tile, x_ref[...],
                                preferred_element_type=jnp.float32)

        @pl.when(n_idx == pl.num_programs(1) - 1)
        def _():
            o_ref[...] = acc_ref[...].astype(o_ref.dtype)

    return kernel


def anchor_selector(Q, X):
    """Q: [N_anchors, N] logits, X: [N, D] -> anchors: [N_anchors, D]."""
    A, N = Q.shape
    N2, D = X.shape
    assert N == N2, "Q and X disagree on N"
    out_dtype = X.dtype

    # Softmax is D-invariant: compute it once, up front (Pallas kernel 1).
    P = _softmax_rows(Q, out_dtype)

    tn, Np = _choose_n_tile(N)
    td, Dp = _choose_d_tile(D)
    gn, gd = Np // tn, Dp // td

    # Wrapper-side zero padding for awkward shapes: padded P columns are
    # exactly zero, so the zero-padded X rows contribute nothing to the dot.
    if Np != N or Dp != D:
        X = jnp.pad(X, ((0, Np - N), (0, Dp - D)))
    if Np != N:
        P = jnp.pad(P, ((0, 0), (0, Np - N)))

    itemsize = X.dtype.itemsize
    p_resident = A * Np * itemsize <= _RESIDENT_P_BYTES
    if p_resident:
        # (gn, A, tn): fetched into VMEM once (constant block index), sliced
        # per reduction step inside the kernel -> no per-D-tile re-fetch of P.
        P_in = P.reshape(A, gn, tn).transpose(1, 0, 2)
        p_spec = pl.BlockSpec((gn, A, tn), lambda d, n: (0, 0, 0))
        p_bytes = 2 * A * Np * itemsize
    else:
        P_in = P
        p_spec = pl.BlockSpec((A, tn), lambda d, n: (0, n))
        p_bytes = 2 * A * tn * itemsize

    vmem_need = (2 * tn * td * itemsize        # double-buffered X stream
                 + 2 * A * td * itemsize       # double-buffered output tile
                 + p_bytes                     # P (resident or per-tile)
                 + A * td * 4)                 # f32 accumulator scratch
    # Derived from tile sizes; capped at 48 MiB so it is safe on v7x (64 MiB).
    vmem_limit = min(max(32 << 20, int(vmem_need * 5 // 4) + (2 << 20)), 48 << 20)

    out = pl.pallas_call(
        _make_matmul_kernel(p_resident),
        out_shape=jax.ShapeDtypeStruct((A, Dp), out_dtype),
        grid=(gd, gn),                                   # reduction axis last
        in_specs=[
            p_spec,
            pl.BlockSpec((tn, td), lambda d, n: (n, d)),  # streamed X tile
        ],
        out_specs=pl.BlockSpec((A, td), lambda d, n: (0, d)),
        scratch_shapes=[pltpu.VMEM((A, td), jnp.float32)],
        compiler_params=pltpu.CompilerParams(
            dimension_semantics=("parallel", "arbitrary"),
            vmem_limit_bytes=vmem_limit,
        ),
    )(P_in, X)

    return out[:, :D] if Dp != D else out


def reference(Q, X):
    p = jax.nn.softmax(Q.astype(jnp.float32) / TEMPERATURE, axis=1)
    return (p @ X.astype(jnp.float32)).astype(X.dtype)


if __name__ == "__main__":
    key = jax.random.PRNGKey(0)
    k_q, k_x, k_q2, k_x2, k_q3, k_x3 = jax.random.split(key, 6)

    # --- Small demo shapes implied by the module: N embeddings of dim D ---
    N, D, N_anchors = 16, 32, 8
    Q = jax.random.normal(k_q, (N_anchors, N), dtype=jnp.float32)
    X = jax.random.normal(k_x, (N, D), dtype=jnp.float32)

    anchors = anchor_selector(Q, X)
    jax.block_until_ready(anchors)
    ref = reference(Q, X)
    assert anchors.shape == (N_anchors, D)
    assert jnp.allclose(anchors, ref, atol=1e-5, rtol=1e-5), "mismatch (small)"

    # --- Larger shapes exercising the tiled / pipelined / resident-P path ---
    N2, D2, A2 = 2048, 1024, 64          # grid (2, 2): td=512, tn=1024
    Q2 = jax.random.normal(k_q2, (A2, N2), dtype=jnp.float32)
    X2 = jax.random.normal(k_x2, (N2, D2), dtype=jnp.float32)

    anchors2 = anchor_selector(Q2, X2)
    jax.block_until_ready(anchors2)
    ref2 = reference(Q2, X2)
    assert anchors2.shape == (A2, D2)
    assert jnp.allclose(anchors2, ref2, atol=1e-4, rtol=1e-4), "mismatch (tiled)"

    # --- Non-128-divisible shapes exercising the zero-padding path ---
    N3, D3, A3 = 1300, 384, 16
    Q3 = jax.random.normal(k_q3, (A3, N3), dtype=jnp.float32)
    X3 = jax.random.normal(k_x3, (N3, D3), dtype=jnp.float32)

    anchors3 = anchor_selector(Q3, X3)
    jax.block_until_ready(anchors3)
    ref3 = reference(Q3, X3)
    assert anchors3.shape == (A3, D3)
    assert jnp.allclose(anchors3, ref3, atol=1e-4, rtol=1e-4), "mismatch (padded)"

    print("KERNEL_OK")
</pallas_src>

<mosaic_0001>
module attributes {stable_mosaic.version = 11 : i64} {
  func.func @_softmax_kernel(%arg0: memref<8x16xf32, #tpu.memory_space<vmem>>, %arg1: memref<8x16xf32, #tpu.memory_space<vmem>>) attributes {dimension_semantics = [], scalar_prefetch = 0 : i64, scratch_operands = 0 : i64, tpu.core_type = #tpu.core_type<tc>} {
    %c0 = arith.constant 0 : index
    %c0_0 = arith.constant 0 : index
    %0 = vector.load %arg0[%c0, %c0_0] : memref<8x16xf32, #tpu.memory_space<vmem>>, vector<8x16xf32>
    %cst = arith.constant 2.000000e+01 : f32
    %1 = vector.broadcast %cst : f32 to vector<8x16xf32>
    %2 = arith.mulf %0, %1 : vector<8x16xf32>
    %cst_1 = arith.constant dense<0xFF800000> : vector<8xf32>
    %3 = vector.multi_reduction <maximumf>, %2, %cst_1 [1] : vector<8x16xf32> to vector<8xf32>
    %4 = vector.shape_cast %3 : vector<8xf32> to vector<8x1xf32>
    %5 = vector.broadcast %4 : vector<8x1xf32> to vector<8x16xf32>
    %6 = arith.subf %2, %5 : vector<8x16xf32>
    %7 = math.exp %6 : vector<8x16xf32>
    %cst_2 = arith.constant dense<0.000000e+00> : vector<8xf32>
    %8 = vector.multi_reduction <add>, %7, %cst_2 [1] : vector<8x16xf32> to vector<8xf32>
    %9 = vector.shape_cast %8 : vector<8xf32> to vector<8x1xf32>
    %10 = tpu.reciprocal %9 : vector<8x1xf32> -> vector<8x1xf32>
    %11 = vector.broadcast %10 : vector<8x1xf32> to vector<8x16xf32>
    %12 = arith.mulf %7, %11 : vector<8x16xf32>
    %c0_3 = arith.constant 0 : index
    %c0_4 = arith.constant 0 : index
    %13 = vector.load %arg1[%c0_3, %c0_4] : memref<8x16xf32, #tpu.memory_space<vmem>>, vector<8x16xf32>
    tpu.vector_store %arg1[%c0_3, %c0_4], %12 {strides = array<i32>} : memref<8x16xf32, #tpu.memory_space<vmem>>, vector<8x16xf32>,
    return
  }
}

</mosaic_0001>

<bundles_post_ra>
// kernel: tpu_custom_call.1
= control target key start
LH: loop header
LB: loop body
LE: loop exit
PB: predicated region body
PF: predicated region fallthrough
CT: control target
= control target key end

     0   :  { %6 = vsyncpa [#allocation3], 0  ;;  %s147_s0 = inlined_call_operand.hbm [shape: f32[8,16], index: 0, kind: input, shape index: {}]   ;;  %s148_s1 = inlined_call_operand.hbm [shape: f32[8,16], index: 1, kind: output, shape index: {}]  }
   0x1   :  { %7 = vsyncpa [#allocation4], 0  ;;  %s13_s8 = sshll.u32 %s147_s0, 4  ;;  %s126_s9 = smov [#allocation2]   ;;  %s14_s8 = int_to_ptr.hbm [resolvable:$true] %s13_s8 }
   0x2   :  { %s15_s10 = sshll.u32 %s126_s9, 4  ;;  %s16_s10 = int_to_ptr.vmem [resolvable:$true] %s15_s10 }
   0x3   :  { %18 = dma.hbm_to_vmem [thread:$0]  %s14_s8, 128, %s16_s10, [#allocation3]  }
   0x4   :  { %122 = dma.done.wait [#allocation3], 128  }
   0x5   :  { %123 = vsyncadd [#allocation3], 4294967168  ;;  %v23_v0 = vld [vmem:[#allocation2] sm:$0xff]  ;;  %vm25_vm0 = vcmask 130048   ;;  %s127_s0 = smov [#allocation5]   ;;  %s58_s14 = sshll.u32 %s148_s1, 4  ;;  %s59_s14 = int_to_ptr.hbm [resolvable:$true] %s58_s14 }
   0x6   :  { %v24_v1 = vmul.f32 20.0, %v23_v0  ;;  %s56_s11 = sshll.u32 %s127_s0, 4  ;;  %s57_s11 = int_to_ptr.vmem [resolvable:$true] %s56_s11 }
   0x8   :  { %v26_v2 = vsel %vm25_vm0, %v24_v1, -inf }
   0x9   :  { %27 = vmax.xlane.f32.xlu0 %v26_v2 }
  0x7c   :  { %v28_v3 = vpop.xlane.xlu0 %27 }
  0x7d   :  { %v29_v4 = vsub.f32 %v24_v1, %v28_v3 }
  0x7f   :  { %v30_v5 = vmul.f32 1.442695, %v29_v4 }
  0x81   :  { %70 = vpow2.f32 %v30_v5 }
  0x87   :  { %v71_v6 = vpop.eup %70 }
  0x88   :  { %v32_v7 = vsel %vm25_vm0, %v71_v6, 0.0 }
  0x89   :  { %33 = vadd.xlane.f32.xlu0 %v32_v7 }
  0xfc   :  { %v34_v8 = vpop.xlane.xlu0 %33 }
  0xfd   :  { %72 = vrcp.f32 %v34_v8  ;;  %v46_v12 = vand.u32 2147483648, %v34_v8  ;;  %v44_v14 = vand.u32 2147483647, %v34_v8  ;;  %vm40_vm2 = vweird.f32 %v34_v8 }
  0xff   :  { %v47_v16 = vor.u32 1.1754944e-38, %v46_v12  ;;  %vm45_vm4 = vcmp.eq.f32.partialorder %v44_v14, 8.507059e+37 }
 0x103   :  { %v73_v9 = vpop.eup %72 }
 0x104   :  { %v36_v10 = vmul.f32 %v73_v9, %v34_v8  ;;  %vm41_vm1 = vweird.f32 %v73_v9 }
 0x105   :  { %vm42_vm3 = vmor %vm40_vm2, %vm41_vm1 }
 0x106   :  { %v37_v11 = vsub.f32 1.0, %v36_v10 }
 0x108   :  { %v38_v13 = vmul.f32 %v73_v9, %v37_v11 }
 0x10a   :  { %v39_v15 = vadd.f32 %v73_v9, %v38_v13 }
 0x10c   :  { %v43_v17 = vsel %vm42_vm3, %v73_v9, %v39_v15 }
 0x10d   :  { %v48_v18 = vsel %vm45_vm4, %v47_v16, %v43_v17 }
 0x10e   :  { %v49_v19 = vmul.f32 %v71_v6, %v48_v18 }
 0x110   :  { %50 = vst.msk [vmem:[#allocation5] sm:$0xff] %vm25_vm0, %v49_v19 }
 0x111   :  { %61 = dma.vmem_to_hbm [thread:$0]  %s57_s11, 128, %s59_s14, [#allocation4]  }
 0x112   :  { %124 = dma.done.wait [#allocation4], 128  }
 0x113   :  { %125 = vsyncadd [#allocation4], 4294967168 }
 0x114   :  { %66 = vsyncpa [#allocation3], 1 }
 0x115   :  { %67 = vsyncpa [#allocation4], 1 }

</bundles_post_ra>
